<compile_context>
chip_gen: v7x
topology: tpu7x:2x2x1
jax: 0.10.0
libtpu: 0.0.40
codegen_flags: <defaults>
</compile_context>

<pallas_src>
import functools

import jax
import jax.numpy as jnp
from jax.experimental import pallas as pl
from jax.experimental.pallas import tpu as pltpu


# ---------------------------------------------------------------------------
# Kernels
# ---------------------------------------------------------------------------
def ffn_relu_resident_kernel(x_ref, w_in_ref, w_out_ref, o_ref):
    """Weights fully VMEM-resident; one grid step per row tile.

    x_ref:     (tm, D) f32   (cast to bf16 in-kernel, VPU has slack under the MXU)
    w_in_ref:  (D, F)  bf16  (resident across the whole grid)
    w_out_ref: (F, D)  bf16  (resident across the whole grid)
    o_ref:     (tm, D) f32
    """
    x = x_ref[...].astype(w_in_ref.dtype)
    hidden = jnp.dot(x, w_in_ref[...], preferred_element_type=jnp.float32)
    activated = jnp.maximum(hidden, 0.0).astype(w_out_ref.dtype)
    o_ref[...] = jnp.dot(activated, w_out_ref[...],
                         preferred_element_type=jnp.float32)


def ffn_relu_streamed_kernel(x_ref, w_in_ref, w_out_ref, o_ref):
    """Weights streamed over an F ("arbitrary") axis.

    The f32 output block is resident across the F axis (its index_map ignores f),
    so we accumulate directly into it — no extra VMEM scratch buffer.
    """
    f = pl.program_id(1)

    @pl.when(f == 0)
    def _init():
        o_ref[...] = jnp.zeros_like(o_ref)

    x = x_ref[...].astype(w_in_ref.dtype)
    hidden = jnp.dot(x, w_in_ref[...], preferred_element_type=jnp.float32)
    activated = jnp.maximum(hidden, 0.0).astype(w_out_ref.dtype)
    o_ref[...] += jnp.dot(activated, w_out_ref[...],
                          preferred_element_type=jnp.float32)


# ---------------------------------------------------------------------------
# Helpers
# ---------------------------------------------------------------------------
def _vmem_capacity_bytes() -> int:
    """Per-generation VMEM capacity (v7x: 64 MiB, v5e/v6e: 128 MiB)."""
    try:
        return int(pltpu.get_tpu_info().vmem_capacity_bytes)
    except Exception:  # conservative fallback (v7x size)
        return 64 * 1024 * 1024


def _pick_tile(dim: int, cap: int, aligns=(256, 128, 8)) -> int:
    """Largest tile <= cap that divides `dim`, preferring large MXU-friendly
    alignments (256 for v6e/v7x 2x256^2 MXU, 128 for v5e)."""
    if dim <= cap:
        return dim
    for align in aligns:
        t = (cap // align) * align
        while t >= align:
            if dim % t == 0:
                return t
            t -= align
    for t in range(min(cap, dim), 0, -1):  # last resort: any divisor
        if dim % t == 0:
            return t
    return dim


# ---------------------------------------------------------------------------
# Wrapper
# ---------------------------------------------------------------------------
@functools.partial(jax.jit, static_argnames=("tm_cap", "tf_cap"))
def ffn_relu(x, w_in, w_out, *, tm_cap=512, tf_cap=512):
    """x: [B, T, D]; w_in: [D, F]; w_out: [F, D] -> [B, T, D]."""
    B, T, D = x.shape
    D2, F = w_in.shape
    assert D == D2 and w_out.shape == (F, D)
    M = B * T

    x2d = x.reshape(M, D)                      # stays f32; cast happens in-kernel
    w_in_b = w_in.astype(jnp.bfloat16)
    w_out_b = w_out.astype(jnp.bfloat16)
    out_dtype = jnp.float32                    # f32 accumulation end-to-end

    capacity = _vmem_capacity_bytes()
    budget = capacity * 3 // 4                 # tile-sizing budget (headroom left)
    vmem_limit = int(capacity * 0.85)          # ~54 MiB v7x, ~109 MiB v5e/v6e

    x_bytes = jnp.dtype(x2d.dtype).itemsize
    weight_bytes = 2 * 2 * D * F               # both weights, bf16

    # ----- row tile -----
    tm = _pick_tile(M, tm_cap)
    # v7x has 2 TensorCores and only the "parallel" row axis shards across them:
    # prefer >= 2 row tiles when M splits cleanly (harmless on v5e/v6e).
    if M // tm < 2 and M % 16 == 0 and M // 2 >= 8:
        tm = M // 2
    # TODO(synk): for tiny-M (decode-like) shapes, shard F across cores with a
    # cross-core partial-sum combine instead of splitting rows.

    def resident_bytes(tm_):
        return (2 * weight_bytes               # weights (conservative 2x buffers)
                + 2 * tm_ * D * x_bytes        # x tile, double-buffered
                + 2 * tm_ * D * 4              # out tile, double-buffered
                + tm_ * F * (4 + 2))           # f32 hidden + bf16 activated temps

    if resident_bytes(tm) <= budget:
        # -------------- RESIDENT mode: weights fetched once --------------
        cost = pl.CostEstimate(
            flops=4 * M * D * F, transcendentals=0,
            bytes_accessed=M * D * x_bytes + weight_bytes + M * D * 4)
        out2d = pl.pallas_call(
            ffn_relu_resident_kernel,
            out_shape=jax.ShapeDtypeStruct((M, D), out_dtype),
            grid_spec=pltpu.PrefetchScalarGridSpec(
                num_scalar_prefetch=0,
                grid=(M // tm,),
                in_specs=[
                    pl.BlockSpec((tm, D), lambda i: (i, 0)),   # x row tile
                    pl.BlockSpec((D, F), lambda i: (0, 0)),    # W_in, resident
                    pl.BlockSpec((F, D), lambda i: (0, 0)),    # W_out, resident
                ],
                out_specs=pl.BlockSpec((tm, D), lambda i: (i, 0)),
            ),
            compiler_params=pltpu.CompilerParams(
                dimension_semantics=("parallel",),
                vmem_limit_bytes=vmem_limit,
            ),
            cost_estimate=cost,
        )(x2d, w_in_b, w_out_b)
    else:
        # ---- STREAMED mode: big row tile for intensity, F chunked last ----
        tm_cap_s, tf_cap_s = 1024, max(tf_cap, 256)

        def streamed_bytes(tm_, tf_):
            return (3 * 2 * D * tf_ * 2        # W_in + W_out chunks, Buffered(3)
                    + 2 * tm_ * D * x_bytes    # x tile, double-buffered
                    + 2 * tm_ * D * 4          # resident/accumulated out block
                    + tm_ * tf_ * (4 + 2))     # hidden temps

        tm_s = _pick_tile(M, tm_cap_s)
        tf_s = _pick_tile(F, tf_cap_s, aligns=(256, 128, 8))
        while (streamed_bytes(tm_s, tf_s) > budget
               and (tm_cap_s > 128 or tf_cap_s > 128)):
            if tf_cap_s > 256:
                tf_cap_s //= 2
            else:
                tm_cap_s //= 2
            tm_s = _pick_tile(M, tm_cap_s)
            tf_s = _pick_tile(F, tf_cap_s, aligns=(256, 128, 8))

        n_row_tiles = M // tm_s
        cost = pl.CostEstimate(
            flops=4 * M * D * F, transcendentals=0,
            bytes_accessed=(M * D * x_bytes
                            + n_row_tiles * weight_bytes   # re-read per row tile
                            + M * D * 4))
        out2d = pl.pallas_call(
            ffn_relu_streamed_kernel,
            out_shape=jax.ShapeDtypeStruct((M, D), out_dtype),
            grid_spec=pltpu.PrefetchScalarGridSpec(
                num_scalar_prefetch=0,
                grid=(M // tm_s, F // tf_s),   # F reduction axis last
                in_specs=[
                    pl.BlockSpec((tm_s, D), lambda i, f: (i, 0)),
                    pl.BlockSpec((D, tf_s), lambda i, f: (0, f),
                                 pipeline_mode=pl.Buffered(3)),
                    pl.BlockSpec((tf_s, D), lambda i, f: (f, 0),
                                 pipeline_mode=pl.Buffered(3)),
                ],
                out_specs=pl.BlockSpec((tm_s, D), lambda i, f: (i, 0)),
            ),
            compiler_params=pltpu.CompilerParams(
                dimension_semantics=("parallel", "arbitrary"),
                vmem_limit_bytes=vmem_limit,
            ),
            cost_estimate=cost,
        )(x2d, w_in_b, w_out_b)

    return out2d.reshape(B, T, D).astype(x.dtype)


# ---------------------------------------------------------------------------
# Reference (matching MXU numerics: bf16 operands, f32 accumulation)
# ---------------------------------------------------------------------------
def ffn_relu_reference(x, w_in, w_out):
    xb = x.astype(jnp.bfloat16)
    wib = w_in.astype(jnp.bfloat16)
    wob = w_out.astype(jnp.bfloat16)
    hidden = jnp.einsum("btd,df->btf", xb, wib,
                        preferred_element_type=jnp.float32)
    activated = jnp.maximum(hidden, 0.0).astype(jnp.bfloat16)
    out = jnp.einsum("btf,fd->btd", activated, wob,
                     preferred_element_type=jnp.float32)
    return out.astype(x.dtype)


if __name__ == "__main__":
    # Small shapes implied by the forward: batch=2, seq=8, d_model=32, d_hidden=128.
    B, T, D, F = 2, 8, 32, 128

    key = jax.random.PRNGKey(0)
    k_x, k_in, k_out = jax.random.split(key, 3)

    x = jax.random.normal(k_x, (B, T, D), dtype=jnp.float32)
    w_in = jax.random.normal(k_in, (D, F), dtype=jnp.float32)
    w_out = jax.random.normal(k_out, (F, D), dtype=jnp.float32)

    out = ffn_relu(x, w_in, w_out)
    out = jax.block_until_ready(out)

    ref = ffn_relu_reference(x, w_in, w_out)
    assert out.shape == (B, T, D)
    assert jnp.allclose(out, ref, atol=2e-2, rtol=2e-2), "mismatch vs reference"

    print("KERNEL_OK")
</pallas_src>

<mosaic_0001>
module attributes {stable_mosaic.version = 11 : i64} {
  func.func @ffn_relu_resident_kernel(%arg0: i32, %arg1: memref<8x32xf32, #tpu.memory_space<vmem>>, %arg2: memref<32x128xbf16, #tpu.memory_space<vmem>>, %arg3: memref<128x32xbf16, #tpu.memory_space<vmem>>, %arg4: memref<8x32xf32, #tpu.memory_space<vmem>>) attributes {dimension_semantics = [#tpu.dimension_semantics<parallel>], iteration_bounds = array<i64: 2>, scalar_prefetch = 0 : i64, scratch_operands = 0 : i64, tpu.core_type = #tpu.core_type<tc>, window_params = [{transform_indices = @transform_0, window_bounds = array<i64: 8, 32>}, {pipeline_mode = #tpu.pipeline_mode<synchronous>, transform_indices = @transform_1, window_bounds = array<i64: 32, 128>}, {pipeline_mode = #tpu.pipeline_mode<synchronous>, transform_indices = @transform_2, window_bounds = array<i64: 128, 32>}, {transform_indices = @transform_3, window_bounds = array<i64: 8, 32>}]} {
    %c0 = arith.constant 0 : index
    %c0_0 = arith.constant 0 : index
    %0 = vector.load %arg1[%c0, %c0_0] : memref<8x32xf32, #tpu.memory_space<vmem>>, vector<8x32xf32>
    %1 = arith.truncf %0 : vector<8x32xf32> to vector<8x32xbf16>
    %c0_1 = arith.constant 0 : index
    %c0_2 = arith.constant 0 : index
    %2 = vector.load %arg2[%c0_1, %c0_2] : memref<32x128xbf16, #tpu.memory_space<vmem>>, vector<32x128xbf16>
    %cst = arith.constant dense<0.000000e+00> : vector<8x128xf32>
    %3 = tpu.matmul %1, %2, %cst {dimension_numbers = #tpu.dot_dimension_numbers<[1], [0], [0], [1], [0, 0, 1, 1], [], []>} : vector<8x32xbf16>, vector<32x128xbf16>, vector<8x128xf32> -> vector<8x128xf32>
    %cst_3 = arith.constant 0.000000e+00 : f32
    %4 = vector.broadcast %cst_3 : f32 to vector<8x128xf32>
    %5 = arith.maximumf %3, %4 : vector<8x128xf32>
    %6 = arith.truncf %5 : vector<8x128xf32> to vector<8x128xbf16>
    %c0_4 = arith.constant 0 : index
    %c0_5 = arith.constant 0 : index
    %7 = vector.load %arg3[%c0_4, %c0_5] : memref<128x32xbf16, #tpu.memory_space<vmem>>, vector<128x32xbf16>
    %cst_6 = arith.constant dense<0.000000e+00> : vector<8x32xf32>
    %8 = tpu.matmul %6, %7, %cst_6 {dimension_numbers = #tpu.dot_dimension_numbers<[1], [0], [0], [1], [0, 0, 1, 1], [], []>} : vector<8x128xbf16>, vector<128x32xbf16>, vector<8x32xf32> -> vector<8x32xf32>
    %c0_7 = arith.constant 0 : index
    %c0_8 = arith.constant 0 : index
    %9 = vector.load %arg4[%c0_7, %c0_8] : memref<8x32xf32, #tpu.memory_space<vmem>>, vector<8x32xf32>
    tpu.vector_store %arg4[%c0_7, %c0_8], %8 {strides = array<i32>} : memref<8x32xf32, #tpu.memory_space<vmem>>, vector<8x32xf32>,
    return
  }
  func.func @transform_0(%arg0: i32) -> (i32, i32) {
    %c0_i32 = arith.constant 0 : i32
    %c0_i32_0 = arith.constant 0 : i32
    return %arg0, %c0_i32 : i32, i32
  }
  func.func @transform_1(%arg0: i32) -> (i32, i32) {
    %c0_i32 = arith.constant 0 : i32
    %c0_i32_0 = arith.constant 0 : i32
    %c0_i32_1 = arith.constant 0 : i32
    return %c0_i32, %c0_i32_0 : i32, i32
  }
  func.func @transform_2(%arg0: i32) -> (i32, i32) {
    %c0_i32 = arith.constant 0 : i32
    %c0_i32_0 = arith.constant 0 : i32
    %c0_i32_1 = arith.constant 0 : i32
    return %c0_i32, %c0_i32_0 : i32, i32
  }
  func.func @transform_3(%arg0: i32) -> (i32, i32) {
    %c0_i32 = arith.constant 0 : i32
    %c0_i32_0 = arith.constant 0 : i32
    return %arg0, %c0_i32 : i32, i32
  }
}

</mosaic_0001>

<bundles_post_ra>
// kernel: ffn_relu.1
= control target key start
LH: loop header
LB: loop body
LE: loop exit
PB: predicated region body
PF: predicated region fallthrough
CT: control target
= control target key end

     0   :  { %8 = vsyncpa [#allocation3], 0  ;;  %s740_s0 = inlined_call_operand.vmem [shape: f32[16,32], index: 0, kind: input, shape index: {}]   ;;  %s741_s1 = inlined_call_operand.vmem [shape: bf16[32,128], index: 1, kind: input, shape index: {}]   ;;  %s742_s2 = inlined_call_operand.vmem [shape: bf16[128,32], index: 2, kind: input, shape index: {}]   ;;  %s743_s3 = inlined_call_operand.hbm [shape: f32[16,32], index: 3, kind: output, shape index: {}]  }
   0x1   :  { %10 = vsyncpa [#allocation3 + $0x1], 0  ;;  %s608_s12 = smov 0   ;;  %s610_s13 = smov 0  }
   0x2   :  { %s612_s14 = smov 0   ;;  %s614_s15 = smov 0  }
   0x3 LB: > { %s629_s16 = sadd.s32 4294967295, %s583_s15   ;;  %s409_s17 = sadd.s32 4294967294, %s583_s15   ;;  %s583_s15 = sphi %s614_s15, %s749_s15   ;;  %s579_s14 = sphi %s612_s14, %s748_s14   ;;  %s575_s13 = sphi %s610_s13, %s747_s13   ;;  %s571_s12 = sphi %s608_s12, %s746_s12  }
   0x4   : > { %s633_s18 = sadd.s32 1, %s583_s15   ;;  %s91_s19 = sadd.s32 1, %s579_s14 }
   0x5   : > { %s88_s20 = ssub.s32 %s583_s15, %s633_s18  ;;  %p101_p0 = scmp.ne.s32.totalorder %s579_s14, %s575_s13 }
   0x6   : > { %p89_p1 = scmp.eq.s32.totalorder %s88_s20, 0  ;;  %p102_p2 = scmp.eq.s32.totalorder %s629_s16, 1 }
   0x7   : > { %p107_p3 = scmp.ne.s32.totalorder %s575_s13, %s571_s12  ;;  %p108_p4 = scmp.eq.s32.totalorder %s409_s17, 1 }
   0x8   : > { %s644_s21 = scalar_select %p89_p1, %s579_s14, %s91_s19  }
   0x9   : > { %p646_p5 = por %p102_p2, %p101_p0  ;;  %p650_p6 = por %p108_p4, %p107_p3 }
   0xa   : > { %p412_p7 = scmp.ge.s32.totalorder %s583_s15, 1  ;;  %p139_p8 = scmp.lt.s32.totalorder %s583_s15, 3 }
   0xc   : > { %p140_p9 = pnand %p412_p7, %p139_p8 }
   0xd   : > { %v511_v0 = vld [vmem:[%s741_s1] sm:$0xff] (!%p140_p9)   ;;  %v585_v1 = vmov (!%p140_p9), 0.0   ;;  %v512_v2 = vld [vmem:[%s741_s1 + $0x8] sm:$0xff] (!%p140_p9)   ;;  %vm586_vm0 = vmmov (!%p140_p9), 0   ;;  %p162_p10 = scmp.lt.s32.totalorder (!%p140_p9), %s629_s16, 1  ;;  %vm185_vm1 = vcmask (!%p140_p9), 261120  }
   0xe   : > { %143 = sbr.rel (%p140_p9) target bundleno = 471 (0x1d7), region = 32  ;;  %442 = vmatprep.subr.bf16.mxu0 (!%p140_p9), %v585_v1  ;;  %450 = vmatprep.subr.bf16.mxu1 (!%p140_p9), %v585_v1  ;;  %v513_v3 = vld [vmem:[%s742_s2] sm:$0xff] (!%p140_p9)   ;;  %v514_v4 = vld [vmem:[%s742_s2 + $0x8] sm:$0xff] (!%p140_p9)   ;;  %v515_v7 = vld [vmem:[%s742_s2 + $0x10] sm:$0xff] (!%p140_p9)   ;;  %s159_s4 = sand.u32 (!%p140_p9), 1, %s575_s13  }
   0xf   : > { %443 = vmatpush3.bf16.msra.mxu0 (!%p140_p9), %v511_v0  ;;  %446 = vmatprep.mubr.msk.bf16.mxu0 (!%p140_p9), %vm586_vm0, %v585_v1  ;;  %v516_v8 = vld [vmem:[%s742_s2 + $0x18] sm:$0xff] (!%p140_p9)   ;;  %v517_v9 = vld [vmem:[%s742_s2 + $0x20] sm:$0xff] (!%p140_p9)   ;;  %v518_v10 = vld [vmem:[%s742_s2 + $0x28] sm:$0xff] (!%p140_p9)   ;;  %s413_s5 = sshll.u32 (!%p140_p9), %s159_s4, 3  ;;  %s337_s17 = scalar_lea.sflag (!%p140_p9), [#allocation3], %s159_s4 }
  0x10   : > { %444 = vmatprep.subr.bf16.mxu0 (!%p140_p9), %v585_v1  ;;  %466 = vmatprep.mubr.msk.bf16.mxu1 (!%p140_p9), %vm586_vm0, %v585_v1  ;;  %v519_v11 = vld [vmem:[%s742_s2 + $0x30] sm:$0xff] (!%p140_p9)   ;;  %v520_v12 = vld [vmem:[%s742_s2 + $0x38] sm:$0xff] (!%p140_p9)   ;;  %s161_s7 = scalar_lea.vmem (!%p140_p9), [#allocation2], %s413_s5 }
  0x11   : > { %451 = vmatpush3.bf16.msra.mxu1 (!%p140_p9), %v513_v3  ;;  %s350_s8 = sshll.u32 (!%p140_p9), %s161_s7, 4  ;;  %s699_s8 = int_to_ptr.vmem [resolvable:$true] %s350_s8 }
  0x12   : > { %452 = vmatprep.subr.bf16.mxu1 (!%p140_p9), %v585_v1  ;;  %s521_s19 = scalar_lea.vmem (!%p140_p9), %s699_s8, 128 }
  0x13   : > { %445 = vmatpush3.bf16.msra.mxu0 (!%p140_p9), %v512_v2  ;;  %p522_p11 = scmp.ne.s32.totalorder (!%p140_p9), %s699_s8, %s521_s19 }
  0x15   : > { %s163_s30 = scalar_select %p162_p10, %s629_s16, 1  ;;  %453 = vmatpush3.bf16.msra.mxu1 %v514_v4 }
  0x16   : > { %454 = vmatprep.subr.bf16.mxu1 %v585_v1  ;;  %p523_p12 = pnand %p522_p11, %p646_p5 }
  0x17   : > { %s414_s6 = sshll.u32 %s163_s30, 3 }
  0x18   : > { %s165_s9 = scalar_lea.vmem %s740_s0, %s414_s6  ;;  %s427_s6 = sshll.u32 %s629_s16, 7 }
  0x19   : > { %v167_v5 = vld [vmem:[%s165_s9] sm:$0xff]  ;;  %455 = vmatpush3.bf16.msra.mxu1 %v515_v7  ;;  %s697_s11 = scalar_lea.hbm %s743_s3, %s427_s6  ;;  %p524_p13 = pneg %p523_p12 }
  0x1a   : > { %v168_v6 = vpack.c.bf16 %v167_v5, %v167_v5  ;;  %456 = vmatprep.subr.bf16.mxu1 %v585_v1  ;;  %s587_s16 = smov [#allocation2]  }
  0x1b   : > { %s525_s20 = sshll.u32 %s587_s16, 4  ;;  %s526_s20 = int_to_ptr.vmem [resolvable:$false] %s525_s20 }
  0x1c   : > { %447 = vmatmul.mubr.msk.bf16.vlgmr.msra.gmra.mrb[0].mxu0 %vm185_vm1, %v168_v6  ;;  %s527_s24 = scalar_lea.vmem %s526_s20, 256  ;;  %p528_p0 = scmp.lt.s32.totalorder %s699_s8, %s526_s20 }
  0x1d   : > { %457 = vmatpush3.bf16.msra.mxu1 %v516_v8  ;;  %p529_p1 = scmp.lt.s32.totalorder %s527_s24, %s521_s19 }
  0x1e   : > { %458 = vmatprep.subr.bf16.mxu1 %v585_v1 }
  0x1f   : > { %p530_p2 = por %p529_p1, %p528_p0 }
  0x21   : > { %459 = vmatpush3.bf16.msra.mxu1 %v517_v9  ;;  %p531_p3 = pnand %p530_p2, %p524_p13 }
  0x22   : > { %460 = vmatprep.subr.bf16.mxu1 %v585_v1 }
  0x25   : > { %461 = vmatpush3.bf16.msra.mxu1 %v518_v10 }
  0x26   : > { %462 = vmatprep.subr.bf16.mxu1 %v585_v1 }
  0x29   : > { %463 = vmatpush3.bf16.msra.mxu1 %v519_v11 }
  0x2a   : > { %464 = vmatprep.subr.bf16.mxu1 %v585_v1 }
  0x2d   : > { %465 = vmatpush3.bf16.msra.mxu1 %v520_v12 }
  0xef   : > { %v223_v13 = vpop.f32.mrb[0].mxu0 }
  0xf0   : > { %v229_v14 = vmax.f32 %v223_v13, 0.0  ;;  %v448_v15 = vpop.f32.mrb[1].mxu0 }
  0xf1   : > { %v226_v16 = vpop.f32.mrb[2].mxu0 }
  0xf2   : > { %v230_v17 = vpack.c.bf16 %v229_v14, %v229_v14  ;;  %v449_v18 = vpop.f32.mrb[3].mxu0 }
  0xf4   : > { %467 = vmatmul.mubr.bf16.vlgmr.msra.gmra.mrb[0].mxu1 %v230_v17 }
 0x1c7   : > { %v329_v19 = vpop.f32.mrb[0].mxu1 }
 0x1c8   : > { %335 = vst.msk [vmem:[%s161_s7] sm:$0xff] %vm185_vm1, %v329_v19  ;;  %v468_v20 = vpop.f32.mrb[1].mxu1 }
 0x1c9   : > { %v332_v21 = vpop.f32.mrb[2].mxu1 }
 0x1ca   : > { %534 = shalt.err (!%p531_p3)
}
 0x1cb   : > { %s535_s25 = scalar_lea.hbm %s697_s11, 128  ;;  %s539_s28 = scalar_lea.hbm %s743_s3, 256 }
 0x1cc   : > { %p536_p4 = scmp.ne.s32.totalorder %s697_s11, %s535_s25  ;;  %p540_p9 = scmp.lt.u32.totalorder %s697_s11, %s743_s3 }
 0x1cd   : > { %p541_p10 = scmp.lt.u32.totalorder %s539_s28, %s535_s25  ;;  %p543_p12 = scmp.lt.u32.totalorder %s535_s25, %s697_s11 }
 0x1ce   : > { %p537_p7 = pnand %p536_p4, %p646_p5 }
 0x1cf   : > { %p542_p11 = por %p541_p10, %p540_p9 }
 0x1d0   : > { %p538_p8 = pneg %p537_p7 }
 0x1d1   : > { %p544_p13 = por %p543_p12, %p542_p11 }
 0x1d3   : > { %p545_p0 = pnand %p544_p13, %p538_p8 }
 0x1d5   : > { %548 = shalt.err (!%p545_p0)
}
 0x1d6   : > { %470 = dma.vmem_to_hbm [thread:$0]  (%p646_p5), %s699_s8, 128, %s697_s11, %s337_s17   ;;  %v469_v22 = vpop.f32.mrb[3].mxu1 }
 0x1d7 PF: > { %p476_p1 = scmp.ge.s32.totalorder %s583_s15, 2  ;;  %s362_s4 = sand.u32 1, %s571_s12  }
 0x1d8   : > { %s363_s5 = scalar_lea.sflag [#allocation3], %s362_s4 }
 0x1d9   : > { %p473_p2 = pnand %p476_p1, %p650_p6 }
 0x1db   : > { %566 = dma.done.wait (!%p473_p2), %s363_s5, 128  }
 0x1dc   : > { %568 = vsyncadd (!%p473_p2), %s363_s5, 4294967168  ;;  %p13_p3 = scmp.ge.s32.totalorder %s633_s18, 4   ;;  %s746_s12 = smov %s575_s13 }
 0x1dd   : > { %s747_s13 = smov %s579_s14  ;;  %s748_s14 = smov %s644_s21 }
 0x1de   : > { %s749_s15 = smov %s633_s18  ;;  %15 = sbr.rel (!%p13_p3) target bundleno = 3 (0x3), region = 67 }
 0x1e5   :  { %368 = vsyncpa [#allocation3], 1 }
 0x1e6   :  { %370 = vsyncpa [#allocation3 + $0x1], 1 }

</bundles_post_ra>
